<compile_context>
chip_gen: v6e
topology: v6e:2x2x1
jax: 0.10.0
libtpu: 0.0.40
codegen_flags: <defaults>
</compile_context>

<pallas_src>
import jax
import jax.numpy as jnp
from jax.experimental import pallas as pl
from jax.experimental.pallas import tpu as pltpu


# ---------------------------------------------------------------------------
# Kernels
# ---------------------------------------------------------------------------
def _fc_bn_rows_kernel(x_ref, w_ref, shift_ref, o_ref):
    # x_ref:     (tm, Cin)  bf16 rows (cast in wrapper, fused with the copy)
    # w_ref:     (Cin, Cout) bf16, BN scale pre-folded
    # shift_ref: (1, Cout)  f32 per-output-channel shift (bias folded with BN)
    # o_ref:     (tm, Cout) f32
    y = jnp.dot(x_ref[...], w_ref[...], preferred_element_type=jnp.float32)
    o_ref[...] = (y + shift_ref[...]).astype(o_ref.dtype)


def _fc_bn_nchw_kernel(x_ref, w_ref, shift_ref, o_ref):
    # x_ref:     (1, Cin, t_hw) f32 slab straight from the NCHW tensor
    # w_ref:     (Cout, Cin) bf16, BN scale pre-folded
    # shift_ref: (Cout, 1)  f32
    # o_ref:     (1, Cout, t_hw) f32, written directly in NCHW layout
    x = x_ref[0].astype(jnp.bfloat16)                                   # (Cin, t_hw)
    y = jnp.dot(w_ref[...], x, preferred_element_type=jnp.float32)      # (Cout, t_hw)
    o_ref[0] = (y + shift_ref[...]).astype(o_ref.dtype)


# ---------------------------------------------------------------------------
# Tiling / VMEM helpers
# ---------------------------------------------------------------------------
def _vmem_budget(weight_bytes, in_tile_bytes, out_tile_bytes, extra_bytes):
    # single-buffered weight + double-buffered activation tiles + headroom
    b = weight_bytes + 2 * in_tile_bytes + 2 * out_tile_bytes + 2 * extra_bytes + (2 << 20)
    return int(min(max(b, 8 << 20), 64 << 20))


def _choose_row_tile(M, C):
    # Big enough to feed the MXU / amortize ~0.35us per-grid-step overhead, small
    # enough that (weight + buffers) fits v7x's 64 MiB VMEM; aim for >=2 grid
    # steps so the "parallel" grid axis can shard across v7x's two TensorCores.
    cap = 512 if C >= 2048 else 1024
    if M <= 256:
        return M                       # single small block (full-extent -> layout-legal)
    tm = min(cap, pl.cdiv(M, 2))       # at least 2 grid steps
    tm = max(256, (tm // 256) * 256)   # multiple of 256 (sublane/MXU friendly)
    return min(tm, cap)


def _choose_hw_tile(HW, C):
    cap = 512 if C >= 2048 else 2048
    if HW <= cap:
        return HW                      # full extent is always layout-legal
    return cap                         # multiple of 128; ragged last block is masked


def _invariant_weight_spec(C, index_map):
    # Grid-invariant weight: single-buffer (no re-fetch) to save VMEM.
    return pl.BlockSpec((C, C), index_map, pipeline_mode=pl.Buffered(1))


# ---------------------------------------------------------------------------
# pallas_call wrappers
# ---------------------------------------------------------------------------
def fc_bn_rows(x2d_bf16, w_ic_oc, shift_row):
    """Fused 1x1-conv(+BN) over an (M, C) bf16 row matrix."""
    M, C = x2d_bf16.shape
    tm = _choose_row_tile(M, C)
    grid = (pl.cdiv(M, tm),)
    vmem_bytes = _vmem_budget(
        weight_bytes=C * C * 2,
        in_tile_bytes=tm * C * x2d_bf16.dtype.itemsize,   # bf16 input tiles
        out_tile_bytes=tm * C * 4,                        # f32 output tiles
        extra_bytes=C * 4,
    )
    return pl.pallas_call(
        _fc_bn_rows_kernel,
        out_shape=jax.ShapeDtypeStruct((M, C), jnp.float32),
        grid_spec=pltpu.PrefetchScalarGridSpec(
            num_scalar_prefetch=0,
            grid=grid,
            in_specs=[
                pl.BlockSpec((tm, C), lambda i: (i, 0)),           # activation rows
                _invariant_weight_spec(C, lambda i: (0, 0)),       # weight (single-buffered)
                pl.BlockSpec((1, C), lambda i: (0, 0)),            # shift (grid-invariant)
            ],
            out_specs=pl.BlockSpec((tm, C), lambda i: (i, 0)),
        ),
        compiler_params=pltpu.CompilerParams(
            dimension_semantics=("parallel",),
            vmem_limit_bytes=vmem_bytes,
        ),
    )(x2d_bf16, w_ic_oc, shift_row)


def fc_bn_nchw(x3d, w_oc_ic, shift_col):
    """Fused 1x1-conv(+BN) directly on an (N, C, H*W) f32 tensor (no transposes)."""
    N, C, HW = x3d.shape
    t_hw = _choose_hw_tile(HW, C)
    grid = (N, pl.cdiv(HW, t_hw))
    vmem_bytes = _vmem_budget(
        weight_bytes=C * C * 2,
        in_tile_bytes=C * t_hw * x3d.dtype.itemsize,      # f32 input slab
        out_tile_bytes=C * t_hw * 4,                      # f32 output slab
        extra_bytes=C * 4,
    )
    return pl.pallas_call(
        _fc_bn_nchw_kernel,
        out_shape=jax.ShapeDtypeStruct((N, C, HW), jnp.float32),
        grid_spec=pltpu.PrefetchScalarGridSpec(
            num_scalar_prefetch=0,
            grid=grid,
            in_specs=[
                pl.BlockSpec((1, C, t_hw), lambda n, j: (n, 0, j)),  # NCHW slab
                _invariant_weight_spec(C, lambda n, j: (0, 0)),      # weight (single-buffered)
                pl.BlockSpec((C, 1), lambda n, j: (0, 0)),           # shift (grid-invariant)
            ],
            out_specs=pl.BlockSpec((1, C, t_hw), lambda n, j: (n, 0, j)),
        ),
        compiler_params=pltpu.CompilerParams(
            dimension_semantics=("parallel", "parallel"),
            vmem_limit_bytes=vmem_bytes,
        ),
    )(x3d, w_oc_ic, shift_col)


# ---------------------------------------------------------------------------
# Module wrapper (parameter folding + layout glue in plain JAX).
# ---------------------------------------------------------------------------
class TRNFcbnPallas:
    def __init__(self, consensus_type="avg", fcbn_type="ori", num_classes=400, key=None):
        self.consensus_type = consensus_type
        self.fcbn_type = fcbn_type
        if consensus_type == "avg":
            self.num_bottleneck = 2048
        elif consensus_type in ("trn", "trn-m"):
            self.num_bottleneck = 512
        else:
            raise ValueError(consensus_type)
        C = self.num_bottleneck

        if key is None:
            key = jax.random.PRNGKey(0)
        k_w, k_b = jax.random.split(key)
        # Deterministic synthetic init (Conv2d(C, C, 1) weight shape is (C, C, 1, 1)).
        bound = 1.0 / (C ** 0.5)
        conv_w = jax.random.uniform(k_w, (C, C), jnp.float32, -bound, bound)  # (Cout, Cin)
        conv_b = jax.random.uniform(k_b, (C,), jnp.float32, -bound, bound)

        # BatchNorm2d(C, affine=True) default params / running stats.
        bn_gamma = jnp.ones((C,), jnp.float32)
        bn_beta = jnp.zeros((C,), jnp.float32)
        bn_mean = jnp.zeros((C,), jnp.float32)
        bn_var = jnp.ones((C,), jnp.float32)
        eps = 1e-5

        # Fold conv bias + inference-mode BN into the weight (scale) and a shift.
        # TODO(synk): training-mode BN (batch statistics per input) is not reproduced.
        if fcbn_type == "bn":
            s = bn_gamma / jnp.sqrt(bn_var + eps)
            w_eff = conv_w * s[:, None]                    # per-output-channel scale folded
            shift = bn_beta + (conv_b - bn_mean) * s
        else:  # 'ori' (module default): no BN, just conv bias
            w_eff = conv_w
            shift = conv_b

        # bf16 weight (MXU-native); two layouts so neither path transposes at runtime.
        self.w_oc_ic = w_eff.astype(jnp.bfloat16)          # (Cout, Cin): y = W @ x
        self.w_ic_oc = w_eff.T.astype(jnp.bfloat16)        # (Cin, Cout): y = x @ W^T
        self.shift_row = shift.reshape(1, C).astype(jnp.float32)
        self.shift_col = shift.reshape(C, 1).astype(jnp.float32)

    def __call__(self, x, x_list):
        N, C, H, W = x.shape
        assert C == self.num_bottleneck
        HW = H * W
        use_nchw = HW >= 128   # lane-dense output without any transpose round trips

        y_x = None
        row_parts = []
        row_sizes = []

        if use_nchw:
            # Transpose-free path: matmul directly on the NCHW layout.
            y_flat = fc_bn_nchw(x.reshape(N, C, HW), self.w_oc_ic, self.shift_col)
            y_x = y_flat.reshape(N, C, H, W)
        else:
            # Tiny spatial extent: fold x into the shared bf16 row matrix (the cast
            # fuses with the transpose copy under jit).
            x_rows = jnp.transpose(x, (0, 2, 3, 1)).reshape(-1, C)
            row_parts.append(x_rows)
            row_sizes.append(x_rows.shape[0])

        # x_list items are (N, C) -> always the row path (no layout change needed).
        list_rows = [jnp.reshape(xi, (-1, C)) for xi in x_list]
        row_parts += list_rows
        row_sizes += [r.shape[0] for r in list_rows]

        out_list = []
        if row_parts:
            all_rows = (jnp.concatenate(row_parts, axis=0) if len(row_parts) > 1
                        else row_parts[0]).astype(jnp.bfloat16)
            y_rows = fc_bn_rows(all_rows, self.w_ic_oc, self.shift_row)  # (M, C) f32

            off = 0
            if not use_nchw:
                n0 = row_sizes[0]
                y_x = jnp.transpose(y_rows[:n0].reshape(N, H, W, C), (0, 3, 1, 2))
                off = n0
                row_sizes = row_sizes[1:]
            for n in row_sizes:
                out_list.append(y_rows[off: off + n].reshape(n, C, 1, 1))
                off += n

        return y_x, out_list


# ---------------------------------------------------------------------------
# Pure-JAX reference (mirrors kernel numerics: bf16 operands, f32 accumulation).
# ---------------------------------------------------------------------------
def _ref_rows(mod, rows):
    y = jnp.dot(rows.astype(jnp.bfloat16), mod.w_ic_oc, preferred_element_type=jnp.float32)
    return y + mod.shift_row


if __name__ == "__main__":
    key = jax.random.PRNGKey(0)
    k_mod, k_x, k_l = jax.random.split(key, 3)

    N = 2
    n_list = 3
    # (fcbn_type, spatial side): HW=16 exercises the fused row path,
    # HW=256 exercises the transpose-free NCHW path.
    cases = [("ori", 4), ("bn", 4), ("ori", 16), ("bn", 16)]

    for fcbn_type, side in cases:
        # consensus_type='trn' -> num_bottleneck=512 (smallest shape the module allows)
        mod = TRNFcbnPallas(consensus_type="trn", fcbn_type=fcbn_type, key=k_mod)
        C = mod.num_bottleneck
        H = W = side

        x = jax.random.normal(k_x, (N, C, H, W), jnp.float32)
        ks = jax.random.split(k_l, n_list)
        x_list = [jax.random.normal(k, (N, C), jnp.float32) for k in ks]

        y, y_list = mod(x, x_list)
        y = jax.block_until_ready(y)
        y_list = [jax.block_until_ready(v) for v in y_list]

        # correctness check vs pure-JAX reference
        x_rows = jnp.transpose(x, (0, 2, 3, 1)).reshape(-1, C)
        ref_y = jnp.transpose(_ref_rows(mod, x_rows).reshape(N, H, W, C), (0, 3, 1, 2))
        assert y.shape == (N, C, H, W)
        assert jnp.allclose(y, ref_y, atol=1e-2, rtol=1e-2)
        for xi, yi in zip(x_list, y_list):
            assert yi.shape == (N, C, 1, 1)
            ref_yi = _ref_rows(mod, xi).reshape(N, C, 1, 1)
            assert jnp.allclose(yi, ref_yi, atol=1e-2, rtol=1e-2)

    print("KERNEL_OK")
</pallas_src>

<mosaic_0001>
module attributes {stable_mosaic.version = 11 : i64} {
  func.func @_fc_bn_rows_kernel(%arg0: i32, %arg1: memref<38x512xbf16, #tpu.memory_space<vmem>>, %arg2: memref<512x512xbf16, #tpu.memory_space<vmem>>, %arg3: memref<1x512xf32, #tpu.memory_space<vmem>>, %arg4: memref<38x512xf32, #tpu.memory_space<vmem>>) attributes {dimension_semantics = [#tpu.dimension_semantics<parallel>], iteration_bounds = array<i64: 1>, scalar_prefetch = 0 : i64, scratch_operands = 0 : i64, tpu.core_type = #tpu.core_type<tc>, window_params = [{transform_indices = @transform_0, window_bounds = array<i64: 38, 512>}, {pipeline_mode = #tpu.pipeline_mode<synchronous>, transform_indices = @transform_1, window_bounds = array<i64: 512, 512>}, {pipeline_mode = #tpu.pipeline_mode<synchronous>, transform_indices = @transform_2, window_bounds = array<i64: 1, 512>}, {transform_indices = @transform_3, window_bounds = array<i64: 38, 512>}]} {
    %c0 = arith.constant 0 : index
    %c0_0 = arith.constant 0 : index
    %0 = vector.load %arg1[%c0, %c0_0] : memref<38x512xbf16, #tpu.memory_space<vmem>>, vector<38x512xbf16>
    %c0_1 = arith.constant 0 : index
    %c0_2 = arith.constant 0 : index
    %1 = vector.load %arg2[%c0_1, %c0_2] : memref<512x512xbf16, #tpu.memory_space<vmem>>, vector<512x512xbf16>
    %cst = arith.constant dense<0.000000e+00> : vector<38x512xf32>
    %2 = tpu.matmul %0, %1, %cst {dimension_numbers = #tpu.dot_dimension_numbers<[1], [0], [0], [1], [0, 0, 1, 1], [], []>} : vector<38x512xbf16>, vector<512x512xbf16>, vector<38x512xf32> -> vector<38x512xf32>
    %c0_3 = arith.constant 0 : index
    %c0_4 = arith.constant 0 : index
    %3 = vector.load %arg3[%c0_3, %c0_4] : memref<1x512xf32, #tpu.memory_space<vmem>>, vector<1x512xf32>
    %4 = vector.broadcast %3 : vector<1x512xf32> to vector<38x512xf32>
    %5 = arith.addf %2, %4 : vector<38x512xf32>
    %c0_5 = arith.constant 0 : index
    %c0_6 = arith.constant 0 : index
    %6 = vector.load %arg4[%c0_5, %c0_6] : memref<38x512xf32, #tpu.memory_space<vmem>>, vector<38x512xf32>
    tpu.vector_store %arg4[%c0_5, %c0_6], %5 {strides = array<i32>} : memref<38x512xf32, #tpu.memory_space<vmem>>, vector<38x512xf32>,
    return
  }
  func.func @transform_0(%arg0: i32) -> (i32, i32) {
    %c0_i32 = arith.constant 0 : i32
    %c0_i32_0 = arith.constant 0 : i32
    return %arg0, %c0_i32 : i32, i32
  }
  func.func @transform_1(%arg0: i32) -> (i32, i32) {
    %c0_i32 = arith.constant 0 : i32
    %c0_i32_0 = arith.constant 0 : i32
    %c0_i32_1 = arith.constant 0 : i32
    return %c0_i32, %c0_i32_0 : i32, i32
  }
  func.func @transform_2(%arg0: i32) -> (i32, i32) {
    %c0_i32 = arith.constant 0 : i32
    %c0_i32_0 = arith.constant 0 : i32
    %c0_i32_1 = arith.constant 0 : i32
    return %c0_i32, %c0_i32_0 : i32, i32
  }
  func.func @transform_3(%arg0: i32) -> (i32, i32) {
    %c0_i32 = arith.constant 0 : i32
    %c0_i32_0 = arith.constant 0 : i32
    return %arg0, %c0_i32 : i32, i32
  }
}

</mosaic_0001>

<bundles_post_ra>
// kernel: tpu_custom_call.1
= control target key start
LH: loop header
LB: loop body
LE: loop exit
PB: predicated region body
PF: predicated region fallthrough
CT: control target
= control target key end

     0   :  { %8 = vsyncpa [#allocation3], 0  ;;  %s1726_s0 = inlined_call_operand.hbm [shape: bf16[38,512], index: 0, kind: input, shape index: {}]   ;;  %s1727_s1 = inlined_call_operand.hbm [shape: bf16[512,512], index: 1, kind: input, shape index: {}]   ;;  %s1728_s2 = inlined_call_operand.hbm [shape: f32[1,512], index: 2, kind: input, shape index: {}]   ;;  %s1729_s3 = inlined_call_operand.hbm [shape: f32[38,512], index: 3, kind: output, shape index: {}]  }
   0x1   :  { %9 = vsyncpa [#allocation6], 0 }
   0x2   :  { %10 = vsyncpa [#allocation4], 0  ;;  %s1632_s12 = smov [#allocation5]   ;;  %s1633_s14 = smov [#allocation2]  }
   0x3   :  { %s28_s13 = sshll.u32 %s1632_s12, 4  ;;  %s16_s15 = sshll.u32 %s1633_s14, 4  ;;  %s29_s13 = int_to_ptr.vmem [resolvable:$true] %s28_s13  ;;  %s17_s15 = int_to_ptr.vmem [resolvable:$true] %s16_s15 }
   0x4   :  { %s1554_s16 = scalar_lea.vmem %s29_s13, 16384  ;;  %p1559_p1 = scmp.lt.s32.totalorder %s29_s13, %s29_s13 }
   0x5   :  { %p1555_p0 = scmp.ne.s32.totalorder %s29_s13, %s1554_s16  ;;  %p1560_p2 = scmp.lt.s32.totalorder %s1554_s16, %s1554_s16 }
   0x7   :  { %p1561_p3 = por %p1560_p2, %p1559_p1 }
   0x9   :  { %p1562_p4 = pnand %p1561_p3, %p1555_p0 }
   0xb   :  { %1565 = shalt.err (!%p1562_p4)
}
   0xc   :  { %s1634_s17 = smov 256   ;;  %s1635_s18 = smov 16  }
   0xd   :  { %34 = dma.hbm_to_vmem [thread:$0]  %s1727_s1, 16384, %s29_s13, [#allocation6], %s1634_s17, %s1634_s17, %s1635_s18  }
   0xe   :  { %s1574_s21 = scalar_lea.vmem %s17_s15, 1280  ;;  %p1579_p6 = scmp.lt.s32.totalorder %s17_s15, %s17_s15 }
   0xf   :  { %p1575_p5 = scmp.ne.s32.totalorder %s17_s15, %s1574_s21  ;;  %p1580_p7 = scmp.lt.s32.totalorder %s1574_s21, %s1574_s21 }
  0x11   :  { %p1581_p8 = por %p1580_p7, %p1579_p6 }
  0x13   :  { %p1582_p9 = pnand %p1581_p8, %p1575_p5 }
  0x15   :  { %1585 = shalt.err (!%p1582_p9)
}
  0x16   :  { %22 = dma.hbm_to_vmem [thread:$0]  %s1726_s0, 1280, %s17_s15, [#allocation3], %s1634_s17, %s1634_s17, %s1635_s18  }
  0x17   :  { %s1636_s24 = smov [#allocation7]  }
  0x18   :  { %s41_s25 = sshll.u32 %s1636_s24, 4  ;;  %s42_s25 = int_to_ptr.vmem [resolvable:$true] %s41_s25 }
  0x19   :  { %s1594_s26 = scalar_lea.vmem %s42_s25, 64  ;;  %p1599_p11 = scmp.lt.s32.totalorder %s42_s25, %s42_s25 }
  0x1a   :  { %p1595_p10 = scmp.ne.s32.totalorder %s42_s25, %s1594_s26  ;;  %p1600_p12 = scmp.lt.s32.totalorder %s1594_s26, %s1594_s26 }
  0x1c   :  { %p1601_p13 = por %p1600_p12, %p1599_p11 }
  0x1e   :  { %p1602_p0 = pnand %p1601_p13, %p1595_p10 }
  0x20   :  { %1605 = shalt.err (!%p1602_p0)
}
  0x21   :  { %44 = dma.hbm_to_vmem [thread:$0]  %s1728_s2, 64, %s42_s25, [#allocation6]  }
  0x22   :  { %1626 = dma.done.wait [#allocation3], 1280  }
  0x23   :  { %1627 = vsyncadd [#allocation3], 4294966016 }
  0x24   :  { %1628 = dma.done.wait [#allocation6], 16448  }
  0x25   :  { %1629 = vsyncadd [#allocation6], 4294950848  ;;  %v1338_v0 = vld [vmem:[#allocation5 + $0xe4] ss:$16 sps:$4 sm:$0xff]   ;;  %v1342_v2 = vld [vmem:[#allocation5 + $0xe0] ss:$16 sps:$4 sm:$0xff]  }
  0x26   :  { %v1340_v1 = vld [vmem:[#allocation5 + $0x2e4] ss:$16 sps:$4 sm:$0xff]   ;;  %908 = vmatprep.subr.bf16.mxu0 %v1338_v0  ;;  %v1343_v3 = vld [vmem:[#allocation5 + $0x2e0] ss:$16 sps:$4 sm:$0xff]   ;;  %v1671_v51 = vld [vmem:[#allocation2 + $0xc] ss:$16 sps:$4 sm:$0xff]  }
  0x27   :  { %969 = vmatprep.subr.bf16.mxu1 %v1340_v1  ;;  %v1344_v4 = vld [vmem:[#allocation5 + $0xc4] ss:$16 sps:$4 sm:$0xff]   ;;  %909 = vmatpush1.bf16.msra.mxu0 %v1342_v2  ;;  %v1348_v6 = vld [vmem:[#allocation5 + $0xc0] ss:$16 sps:$4 sm:$0xff]   ;;  %v1442_v2 = vld [vmem:[#allocation5 + $0xec] ss:$16 sps:$4 sm:$0xff]  }
  0x28   :  { %970 = vmatpush1.bf16.msra.mxu1 %v1343_v3  ;;  %v1346_v5 = vld [vmem:[#allocation5 + $0x2c4] ss:$16 sps:$4 sm:$0xff]   ;;  %910 = vmatprep.subr.bf16.mxu0 %v1344_v4  ;;  %v1349_v7 = vld [vmem:[#allocation5 + $0x2c0] ss:$16 sps:$4 sm:$0xff]   ;;  %v1445_v3 = vld [vmem:[#allocation5 + $0x2ec] ss:$16 sps:$4 sm:$0xff]  }
  0x29   :  { %971 = vmatprep.subr.bf16.mxu1 %v1346_v5  ;;  %v1350_v8 = vld [vmem:[#allocation5 + $0xa4] ss:$16 sps:$4 sm:$0xff]   ;;  %v1354_v10 = vld [vmem:[#allocation5 + $0xa0] ss:$16 sps:$4 sm:$0xff]   ;;  %1001 = vmatprep.mubr.bf16.mxu1 %v1671_v51  ;;  %v1677_v5 = vld [vmem:[#allocation2 + $0x8] ss:$16 sps:$4 sm:$0xff]  }
  0x2a   :  { %v1352_v9 = vld [vmem:[#allocation5 + $0x2a4] ss:$16 sps:$4 sm:$0xff]   ;;  %v1355_v11 = vld [vmem:[#allocation5 + $0x2a0] ss:$16 sps:$4 sm:$0xff]   ;;  %s1637_s0 = smov [#allocation8]  }
  0x2b   :  { %911 = vmatpush1.bf16.msra.mxu0 %v1348_v6  ;;  %v1356_v12 = vld [vmem:[#allocation5 + $0x84] ss:$16 sps:$4 sm:$0xff]   ;;  %v1360_v14 = vld [vmem:[#allocation5 + $0x80] ss:$16 sps:$4 sm:$0xff]   ;;  %v1440_v6 = vld [vmem:[#allocation5 + $0xe8] ss:$16 sps:$4 sm:$0xff]  }
  0x2c   :  { %972 = vmatpush1.bf16.msra.mxu1 %v1349_v7  ;;  %912 = vmatprep.subr.bf16.mxu0 %v1350_v8  ;;  %v1358_v13 = vld [vmem:[#allocation5 + $0x284] ss:$16 sps:$4 sm:$0xff]   ;;  %v1361_v15 = vld [vmem:[#allocation5 + $0x280] ss:$16 sps:$4 sm:$0xff]   ;;  %v1443_v7 = vld [vmem:[#allocation5 + $0x2e8] ss:$16 sps:$4 sm:$0xff]  }
  0x2d   :  { %973 = vmatprep.subr.bf16.mxu1 %v1352_v9  ;;  %v1362_v16 = vld [vmem:[#allocation5 + $0x64] ss:$16 sps:$4 sm:$0xff]   ;;  %v1366_v18 = vld [vmem:[#allocation5 + $0x60] ss:$16 sps:$4 sm:$0xff]   ;;  %v1448_v8 = vld [vmem:[#allocation5 + $0xcc] ss:$16 sps:$4 sm:$0xff]  }
  0x2e   :  { %v1364_v17 = vld [vmem:[#allocation5 + $0x264] ss:$16 sps:$4 sm:$0xff]   ;;  %v1367_v19 = vld [vmem:[#allocation5 + $0x260] ss:$16 sps:$4 sm:$0xff]   ;;  %v1451_v9 = vld [vmem:[#allocation5 + $0x2cc] ss:$16 sps:$4 sm:$0xff]  }
  0x2f   :  { %913 = vmatpush1.bf16.msra.mxu0 %v1354_v10  ;;  %v1368_v20 = vld [vmem:[#allocation5 + $0x44] ss:$16 sps:$4 sm:$0xff]   ;;  %v1372_v22 = vld [vmem:[#allocation5 + $0x40] ss:$16 sps:$4 sm:$0xff]   ;;  %v1446_v10 = vld [vmem:[#allocation5 + $0xc8] ss:$16 sps:$4 sm:$0xff]  }
  0x30   :  { %974 = vmatpush1.bf16.msra.mxu1 %v1355_v11  ;;  %914 = vmatprep.subr.bf16.mxu0 %v1356_v12  ;;  %v1370_v21 = vld [vmem:[#allocation5 + $0x244] ss:$16 sps:$4 sm:$0xff]   ;;  %v1373_v23 = vld [vmem:[#allocation5 + $0x240] ss:$16 sps:$4 sm:$0xff]   ;;  %v1449_v11 = vld [vmem:[#allocation5 + $0x2c8] ss:$16 sps:$4 sm:$0xff]  }
  0x31   :  { %975 = vmatprep.subr.bf16.mxu1 %v1358_v13  ;;  %v1374_v24 = vld [vmem:[#allocation5 + $0x24] ss:$16 sps:$4 sm:$0xff]   ;;  %v1378_v26 = vld [vmem:[#allocation5 + $0x20] ss:$16 sps:$4 sm:$0xff]   ;;  %v1454_v12 = vld [vmem:[#allocation5 + $0xac] ss:$16 sps:$4 sm:$0xff]  }
  0x32   :  { %v1376_v25 = vld [vmem:[#allocation5 + $0x224] ss:$16 sps:$4 sm:$0xff]   ;;  %v1379_v27 = vld [vmem:[#allocation5 + $0x220] ss:$16 sps:$4 sm:$0xff]   ;;  %v1457_v13 = vld [vmem:[#allocation5 + $0x2ac] ss:$16 sps:$4 sm:$0xff]  }
  0x33   :  { %915 = vmatpush1.bf16.msra.mxu0 %v1360_v14  ;;  %v1380_v28 = vld [vmem:[#allocation5 + $0x4] ss:$16 sps:$4 sm:$0xff]   ;;  %v1384_v30 = vld [vmem:[#allocation5] ss:$16 sps:$4 sm:$0xff]   ;;  %v1452_v14 = vld [vmem:[#allocation5 + $0xa8] ss:$16 sps:$4 sm:$0xff]  }
  0x34   :  { %976 = vmatpush1.bf16.msra.mxu1 %v1361_v15  ;;  %916 = vmatprep.subr.bf16.mxu0 %v1362_v16  ;;  %v1382_v29 = vld [vmem:[#allocation5 + $0x204] ss:$16 sps:$4 sm:$0xff]   ;;  %v1385_v31 = vld [vmem:[#allocation5 + $0x200] ss:$16 sps:$4 sm:$0xff]   ;;  %v1455_v15 = vld [vmem:[#allocation5 + $0x2a8] ss:$16 sps:$4 sm:$0xff]  }
  0x35   :  { %977 = vmatprep.subr.bf16.mxu1 %v1364_v17  ;;  %v1386_v32 = vld [vmem:[#allocation5 + $0x1e4] ss:$16 sps:$4 sm:$0xff]   ;;  %v1390_v34 = vld [vmem:[#allocation5 + $0x1e0] ss:$16 sps:$4 sm:$0xff]   ;;  %v1460_v16 = vld [vmem:[#allocation5 + $0x8c] ss:$16 sps:$4 sm:$0xff]  }
  0x36   :  { %v1388_v33 = vld [vmem:[#allocation5 + $0x3e4] ss:$16 sps:$4 sm:$0xff]   ;;  %v1391_v35 = vld [vmem:[#allocation5 + $0x3e0] ss:$16 sps:$4 sm:$0xff]   ;;  %v1463_v17 = vld [vmem:[#allocation5 + $0x28c] ss:$16 sps:$4 sm:$0xff]  }
  0x37   :  { %917 = vmatpush1.bf16.msra.mxu0 %v1366_v18  ;;  %v1392_v36 = vld [vmem:[#allocation5 + $0x1c4] ss:$16 sps:$4 sm:$0xff]   ;;  %v1396_v38 = vld [vmem:[#allocation5 + $0x1c0] ss:$16 sps:$4 sm:$0xff]   ;;  %v1458_v18 = vld [vmem:[#allocation5 + $0x88] ss:$16 sps:$4 sm:$0xff]  }
  0x38   :  { %978 = vmatpush1.bf16.msra.mxu1 %v1367_v19  ;;  %918 = vmatprep.subr.bf16.mxu0 %v1368_v20  ;;  %v1394_v37 = vld [vmem:[#allocation5 + $0x3c4] ss:$16 sps:$4 sm:$0xff]   ;;  %v1397_v39 = vld [vmem:[#allocation5 + $0x3c0] ss:$16 sps:$4 sm:$0xff]   ;;  %v1461_v19 = vld [vmem:[#allocation5 + $0x288] ss:$16 sps:$4 sm:$0xff]  }
  0x39   :  { %979 = vmatprep.subr.bf16.mxu1 %v1370_v21  ;;  %v1398_v40 = vld [vmem:[#allocation5 + $0x1a4] ss:$16 sps:$4 sm:$0xff]   ;;  %v1402_v42 = vld [vmem:[#allocation5 + $0x1a0] ss:$16 sps:$4 sm:$0xff]   ;;  %v1466_v20 = vld [vmem:[#allocation5 + $0x6c] ss:$16 sps:$4 sm:$0xff]  }
  0x3a   :  { %v1400_v41 = vld [vmem:[#allocation5 + $0x3a4] ss:$16 sps:$4 sm:$0xff]   ;;  %v1403_v43 = vld [vmem:[#allocation5 + $0x3a0] ss:$16 sps:$4 sm:$0xff]   ;;  %v1469_v21 = vld [vmem:[#allocation5 + $0x26c] ss:$16 sps:$4 sm:$0xff]  }
  0x3b   :  { %919 = vmatpush1.bf16.msra.mxu0 %v1372_v22  ;;  %v1404_v44 = vld [vmem:[#allocation5 + $0x184] ss:$16 sps:$4 sm:$0xff]   ;;  %v1408_v46 = vld [vmem:[#allocation5 + $0x180] ss:$16 sps:$4 sm:$0xff]   ;;  %s1177_s2 = sshll.u32 %s1637_s0, 4  ;;  %s1178_s2 = int_to_ptr.vmem [resolvable:$true] %s1177_s2 }
  0x3c   :  { %980 = vmatpush1.bf16.msra.mxu1 %v1373_v23  ;;  %920 = vmatprep.subr.bf16.mxu0 %v1374_v24  ;;  %v1406_v45 = vld [vmem:[#allocation5 + $0x384] ss:$16 sps:$4 sm:$0xff]   ;;  %v1409_v47 = vld [vmem:[#allocation5 + $0x380] ss:$16 sps:$4 sm:$0xff]   ;;  %v1685_v24 = vld [vmem:[#allocation2 + $0x2c] ss:$16 sps:$4 sm:$0xff]   ;;  %p1611_p2 = scmp.lt.s32.totalorder %s1178_s2, %s1178_s2 }
  0x3d   :  { %981 = vmatprep.subr.bf16.mxu1 %v1376_v25  ;;  %v1410_v48 = vld [vmem:[#allocation5 + $0x164] ss:$16 sps:$4 sm:$0xff]   ;;  %v1414_v52 = vld [vmem:[#allocation5 + $0x160] ss:$16 sps:$4 sm:$0xff]   ;;  %v1687_v25 = vld [vmem:[#allocation2 + $0x28] ss:$16 sps:$4 sm:$0xff]  }
  0x3e   :  { %v1669_v49 = vld [vmem:[#allocation2 + $0x4] ss:$16 sps:$4 sm:$0xff]   ;;  %v1415_v53 = vld [vmem:[#allocation5 + $0x360] ss:$16 sps:$4 sm:$0xff]   ;;  %s1606_s28 = scalar_lea.vmem %s1178_s2, 2560 }
  0x3f   :  { %921 = vmatpush1.bf16.msra.mxu0 %v1378_v26  ;;  %v1412_v50 = vld [vmem:[#allocation5 + $0x364] ss:$16 sps:$4 sm:$0xff]   ;;  %940 = vmatprep.mubr.bf16.mxu0 %v1669_v49  ;;  %v1420_v56 = vld [vmem:[#allocation5 + $0x140] ss:$16 sps:$4 sm:$0xff]   ;;  %v1464_v26 = vld [vmem:[#allocation5 + $0x68] ss:$16 sps:$4 sm:$0xff]   ;;  %p1607_p1 = scmp.ne.s32.totalorder %s1178_s2, %s1606_s28  ;;  %p1612_p3 = scmp.lt.s32.totalorder %s1606_s28, %s1606_s28 }
  0x40   :  { %982 = vmatpush1.bf16.msra.mxu1 %v1379_v27  ;;  %922 = vmatprep.subr.bf16.mxu0 %v1380_v28  ;;  %v1416_v54 = vld [vmem:[#allocation5 + $0x144] ss:$16 sps:$4 sm:$0xff]   ;;  %v1421_v57 = vld [vmem:[#allocation5 + $0x340] ss:$16 sps:$4 sm:$0xff]   ;;  %v1467_v27 = vld [vmem:[#allocation5 + $0x268] ss:$16 sps:$4 sm:$0xff]  }
  0x41   :  { %983 = vmatprep.subr.bf16.mxu1 %v1382_v29  ;;  %v1418_v55 = vld [vmem:[#allocation5 + $0x344] ss:$16 sps:$4 sm:$0xff]   ;;  %v1426_v60 = vld [vmem:[#allocation5 + $0x120] ss:$16 sps:$4 sm:$0xff]   ;;  %v1472_v28 = vld [vmem:[#allocation5 + $0x4c] ss:$16 sps:$4 sm:$0xff]   ;;  %p1613_p4 = por %p1612_p3, %p1611_p2 }
  0x42   :  { %v1422_v58 = vld [vmem:[#allocation5 + $0x124] ss:$16 sps:$4 sm:$0xff]   ;;  %v1427_v61 = vld [vmem:[#allocation5 + $0x320] ss:$16 sps:$4 sm:$0xff]   ;;  %v1475_v29 = vld [vmem:[#allocation5 + $0x24c] ss:$16 sps:$4 sm:$0xff]  }
  0x43   :  { %923 = vmatpush1.bf16.msra.mxu0 %v1384_v30  ;;  %v1424_v59 = vld [vmem:[#allocation5 + $0x324] ss:$16 sps:$4 sm:$0xff]   ;;  %v1432_v0 = vld [vmem:[#allocation5 + $0x100] ss:$16 sps:$4 sm:$0xff]   ;;  %p1614_p5 = pnand %p1613_p4, %p1607_p1 }
  0x44   :  { %984 = vmatpush1.bf16.msra.mxu1 %v1385_v31  ;;  %924 = vmatprep.subr.bf16.mxu0 %v1386_v32  ;;  %v1428_v62 = vld [vmem:[#allocation5 + $0x104] ss:$16 sps:$4 sm:$0xff]   ;;  %v1433_v1 = vld [vmem:[#allocation5 + $0x300] ss:$16 sps:$4 sm:$0xff]  }
  0x45   :  { %985 = vmatprep.subr.bf16.mxu1 %v1388_v33  ;;  %v1430_v63 = vld [vmem:[#allocation5 + $0x304] ss:$16 sps:$4 sm:$0xff]   ;;  %v1675_v4 = vld [vmem:[#allocation2] ss:$16 sps:$4 sm:$0xff]   ;;  %v63_v33 = vld [vmem:[#allocation2 + $0x48] sm:$0x77] }
  0x46   :  { %v1681_v22 = vld [vmem:[#allocation2 + $0x24] ss:$16 sps:$4 sm:$0xff]   ;;  %v1683_v23 = vld [vmem:[#allocation2 + $0x20] ss:$16 sps:$4 sm:$0xff]  }
  0x47   :  { %925 = vmatpush2.bf16.msra.mxu0 %v1390_v34  ;;  %v62_v30 = vld [vmem:[#allocation2 + $0x40] sm:$0x77]  ;;  %v1470_v34 = vld [vmem:[#allocation5 + $0x48] ss:$16 sps:$4 sm:$0xff]  }
  0x48   :  { %986 = vmatpush2.bf16.msra.mxu1 %v1391_v35  ;;  %926 = vmatprep.subr.bf16.mxu0 %v1392_v36  ;;  %v1693_v31 = vcombine.high %v62_v30, %v62_v30  ;;  %v1695_v32 = vcombine.low %v62_v30, %v62_v30  ;;  %v1473_v35 = vld [vmem:[#allocation5 + $0x248] ss:$16 sps:$4 sm:$0xff]   ;;  %v1697_v36 = vcombine.high %v63_v33, %v63_v33 }
  0x49   :  { %987 = vmatprep.subr.bf16.mxu1 %v1394_v37  ;;  %v1699_v37 = vcombine.low %v63_v33, %v63_v33 }
  0x4b   :  { %927 = vmatpush2.bf16.msra.mxu0 %v1396_v38  ;;  %v1478_v38 = vld [vmem:[#allocation5 + $0x2c] ss:$16 sps:$4 sm:$0xff]  }
  0x4c   :  { %988 = vmatpush2.bf16.msra.mxu1 %v1397_v39  ;;  %928 = vmatprep.subr.bf16.mxu0 %v1398_v40  ;;  %v1481_v39 = vld [vmem:[#allocation5 + $0x22c] ss:$16 sps:$4 sm:$0xff]   ;;  %v1476_v40 = vld [vmem:[#allocation5 + $0x28] ss:$16 sps:$4 sm:$0xff]  }
  0x4d   :  { %989 = vmatprep.subr.bf16.mxu1 %v1400_v41  ;;  %v1479_v41 = vld [vmem:[#allocation5 + $0x228] ss:$16 sps:$4 sm:$0xff]  }
  0x4f   :  { %929 = vmatpush2.bf16.msra.mxu0 %v1402_v42  ;;  %v1484_v42 = vld [vmem:[#allocation5 + $0xc] ss:$16 sps:$4 sm:$0xff]  }
  0x50   :  { %990 = vmatpush2.bf16.msra.mxu1 %v1403_v43  ;;  %930 = vmatprep.subr.bf16.mxu0 %v1404_v44  ;;  %v1487_v43 = vld [vmem:[#allocation5 + $0x20c] ss:$16 sps:$4 sm:$0xff]   ;;  %v1482_v44 = vld [vmem:[#allocation5 + $0x8] ss:$16 sps:$4 sm:$0xff]  }
  0x51   :  { %991 = vmatprep.subr.bf16.mxu1 %v1406_v45  ;;  %v1485_v45 = vld [vmem:[#allocation5 + $0x208] ss:$16 sps:$4 sm:$0xff]  }
  0x53   :  { %931 = vmatpush2.bf16.msra.mxu0 %v1408_v46  ;;  %v1490_v46 = vld [vmem:[#allocation5 + $0x1ec] ss:$16 sps:$4 sm:$0xff]  }
  0x54   :  { %992 = vmatpush2.bf16.msra.mxu1 %v1409_v47  ;;  %932 = vmatprep.subr.bf16.mxu0 %v1410_v48  ;;  %v1493_v47 = vld [vmem:[#allocation5 + $0x3ec] ss:$16 sps:$4 sm:$0xff]   ;;  %v1488_v48 = vld [vmem:[#allocation5 + $0x1e8] ss:$16 sps:$4 sm:$0xff]  }
  0x55   :  { %993 = vmatprep.subr.bf16.mxu1 %v1412_v50  ;;  %v1491_v50 = vld [vmem:[#allocation5 + $0x3e8] ss:$16 sps:$4 sm:$0xff]  }
  0x57   :  { %933 = vmatpush2.bf16.msra.mxu0 %v1414_v52  ;;  %v1496_v52 = vld [vmem:[#allocation5 + $0x1cc] ss:$16 sps:$4 sm:$0xff]  }
  0x58   :  { %994 = vmatpush2.bf16.msra.mxu1 %v1415_v53  ;;  %934 = vmatprep.subr.bf16.mxu0 %v1416_v54  ;;  %v1499_v53 = vld [vmem:[#allocation5 + $0x3cc] ss:$16 sps:$4 sm:$0xff]  }
  0x59   :  { %995 = vmatprep.subr.bf16.mxu1 %v1418_v55  ;;  %v1502_v54 = vld [vmem:[#allocation5 + $0x1ac] ss:$16 sps:$4 sm:$0xff]  }
  0x5a   :  { %v1505_v55 = vld [vmem:[#allocation5 + $0x3ac] ss:$16 sps:$4 sm:$0xff]  }
  0x5b   :  { %935 = vmatpush2.bf16.msra.mxu0 %v1420_v56  ;;  %v1500_v56 = vld [vmem:[#allocation5 + $0x1a8] ss:$16 sps:$4 sm:$0xff]  }
  0x5c   :  { %996 = vmatpush2.bf16.msra.mxu1 %v1421_v57  ;;  %936 = vmatprep.subr.bf16.mxu0 %v1422_v58  ;;  %v1503_v57 = vld [vmem:[#allocation5 + $0x3a8] ss:$16 sps:$4 sm:$0xff]   ;;  %v1514_v58 = vld [vmem:[#allocation5 + $0x18c] ss:$16 sps:$4 sm:$0xff]  }
  0x5d   :  { %997 = vmatprep.subr.bf16.mxu1 %v1424_v59  ;;  %v1517_v59 = vld [vmem:[#allocation5 + $0x38c] ss:$16 sps:$4 sm:$0xff]  }
  0x5f   :  { %937 = vmatpush2.bf16.msra.mxu0 %v1426_v60  ;;  %v1512_v60 = vld [vmem:[#allocation5 + $0x188] ss:$16 sps:$4 sm:$0xff]  }
  0x60   :  { %998 = vmatpush2.bf16.msra.mxu1 %v1427_v61  ;;  %938 = vmatprep.subr.bf16.mxu0 %v1428_v62  ;;  %v1515_v61 = vld [vmem:[#allocation5 + $0x388] ss:$16 sps:$4 sm:$0xff]   ;;  %v1520_v62 = vld [vmem:[#allocation5 + $0x16c] ss:$16 sps:$4 sm:$0xff]  }
  0x61   :  { %999 = vmatprep.subr.bf16.mxu1 %v1430_v63  ;;  %v1523_v63 = vld [vmem:[#allocation5 + $0x36c] ss:$16 sps:$4 sm:$0xff]  }
  0x63   :  { %939 = vmatpush2.bf16.msra.mxu0 %v1432_v0  ;;  %v1518_v0 = vld [vmem:[#allocation5 + $0x168] ss:$16 sps:$4 sm:$0xff]  }
  0x64   :  { %1000 = vmatpush2.bf16.msra.mxu1 %v1433_v1  ;;  %1030 = vmatprep.subr.bf16.mxu0 %v1442_v2  ;;  %v1521_v1 = vld [vmem:[#allocation5 + $0x368] ss:$16 sps:$4 sm:$0xff]   ;;  %v1530_v2 = vld [vmem:[#allocation5 + $0x14c] ss:$16 sps:$4 sm:$0xff]  }
  0x65   :  { %1091 = vmatprep.subr.bf16.mxu1 %v1445_v3  ;;  %v1533_v3 = vld [vmem:[#allocation5 + $0x34c] ss:$16 sps:$4 sm:$0xff]  }
  0x66   :  { %941 = vmatmul.mubr.bf16.vlgmr.msra.gmra.mxu0 %v1675_v4 }
  0x67   :  { %1002 = vmatmul.mubr.bf16.vlgmr.msra.gmra.mxu1 %v1677_v5  ;;  %1031 = vmatpush1.bf16.msra.mxu0 %v1440_v6  ;;  %v1528_v6 = vld [vmem:[#allocation5 + $0x148] ss:$16 sps:$4 sm:$0xff]  }
  0x68   :  { %1092 = vmatpush1.bf16.msra.mxu1 %v1443_v7  ;;  %1032 = vmatprep.subr.bf16.mxu0 %v1448_v8  ;;  %v1531_v7 = vld [vmem:[#allocation5 + $0x348] ss:$16 sps:$4 sm:$0xff]   ;;  %v1536_v8 = vld [vmem:[#allocation5 + $0x12c] ss:$16 sps:$4 sm:$0xff]  }
  0x69   :  { %1093 = vmatprep.subr.bf16.mxu1 %v1451_v9  ;;  %950 = vmatprep.mubr.bf16.mxu0 %v1681_v22  ;;  %v1539_v9 = vld [vmem:[#allocation5 + $0x32c] ss:$16 sps:$4 sm:$0xff]  }
  0x6a   :  { %1011 = vmatprep.mubr.bf16.mxu1 %v1685_v24 }
  0x6b   :  { %1033 = vmatpush1.bf16.msra.mxu0 %v1446_v10  ;;  %v1534_v10 = vld [vmem:[#allocation5 + $0x128] ss:$16 sps:$4 sm:$0xff]  }
  0x6c   :  { %1094 = vmatpush1.bf16.msra.mxu1 %v1449_v11  ;;  %1034 = vmatprep.subr.bf16.mxu0 %v1454_v12  ;;  %v1537_v11 = vld [vmem:[#allocation5 + $0x328] ss:$16 sps:$4 sm:$0xff]   ;;  %v1542_v12 = vld [vmem:[#allocation5 + $0x10c] ss:$16 sps:$4 sm:$0xff]  }
  0x6d   :  { %1095 = vmatprep.subr.bf16.mxu1 %v1457_v13  ;;  %v1545_v13 = vld [vmem:[#allocation5 + $0x30c] ss:$16 sps:$4 sm:$0xff]  }
  0x6e   :  { %951 = vmatmul.mubr.bf16.gmra.mxu0 %v1683_v23 }
  0x6f   :  { %1035 = vmatpush1.bf16.msra.mxu0 %v1452_v14  ;;  %1012 = vmatmul.mubr.bf16.gmra.mxu1 %v1687_v25  ;;  %v1540_v14 = vld [vmem:[#allocation5 + $0x108] ss:$16 sps:$4 sm:$0xff]  }
  0x70   :  { %1096 = vmatpush1.bf16.msra.mxu1 %v1455_v15  ;;  %1036 = vmatprep.subr.bf16.mxu0 %v1460_v16  ;;  %v1543_v15 = vld [vmem:[#allocation5 + $0x308] ss:$16 sps:$4 sm:$0xff]   ;;  %v194_v16 = vlaneseq }
  0x71   :  { %1097 = vmatprep.subr.bf16.mxu1 %v1463_v17  ;;  %960 = vmatprep.mubr.bf16.mxu0 %v1693_v31  ;;  %v192_v17 = vld [vmem:[#allocation7] sm:$0xf] }
  0x72   :  { %1021 = vmatprep.mubr.bf16.mxu1 %v1697_v36 }
  0x73   :  { %1037 = vmatpush1.bf16.msra.mxu0 %v1458_v18 }
  0x74   :  { %1098 = vmatpush1.bf16.msra.mxu1 %v1461_v19  ;;  %1038 = vmatprep.subr.bf16.mxu0 %v1466_v20 }
  0x75   :  { %1099 = vmatprep.subr.bf16.mxu1 %v1469_v21 }
  0x76   :  { %961 = vmatmul.mubr.bf16.gmra.mxu0 %v1695_v32 }
  0x77   :  { %1039 = vmatpush1.bf16.msra.mxu0 %v1464_v26  ;;  %1022 = vmatmul.mubr.bf16.gmra.mxu1 %v1699_v37 }
  0x78   :  { %1100 = vmatpush1.bf16.msra.mxu1 %v1467_v27  ;;  %1040 = vmatprep.subr.bf16.mxu0 %v1472_v28 }
  0x79   :  { %1101 = vmatprep.subr.bf16.mxu1 %v1475_v29  ;;  %1062 = vmatprep.mubr.bf16.mxu0 %v1669_v49  ;;  %v1494_v49 = vld [vmem:[#allocation5 + $0x1c8] ss:$16 sps:$4 sm:$0xff]  }
  0x7a   :  { %1123 = vmatprep.mubr.bf16.mxu1 %v1671_v51  ;;  %v1497_v51 = vld [vmem:[#allocation5 + $0x3c8] ss:$16 sps:$4 sm:$0xff]  }
  0x7b   :  { %1041 = vmatpush1.bf16.msra.mxu0 %v1470_v34 }
  0x7c   :  { %1102 = vmatpush1.bf16.msra.mxu1 %v1473_v35  ;;  %1042 = vmatprep.subr.bf16.mxu0 %v1478_v38 }
  0x7d   :  { %1103 = vmatprep.subr.bf16.mxu1 %v1481_v39 }
  0x7f   :  { %1043 = vmatpush1.bf16.msra.mxu0 %v1476_v40 }
  0x80   :  { %1104 = vmatpush1.bf16.msra.mxu1 %v1479_v41  ;;  %1044 = vmatprep.subr.bf16.mxu0 %v1484_v42 }
  0x81   :  { %1105 = vmatprep.subr.bf16.mxu1 %v1487_v43 }
  0x83   :  { %1045 = vmatpush1.bf16.msra.mxu0 %v1482_v44 }
  0x84   :  { %1106 = vmatpush1.bf16.msra.mxu1 %v1485_v45  ;;  %1046 = vmatprep.subr.bf16.mxu0 %v1490_v46 }
  0x85   :  { %1107 = vmatprep.subr.bf16.mxu1 %v1493_v47 }
  0x87   :  { %1047 = vmatpush2.bf16.msra.mxu0 %v1488_v48 }
  0x88   :  { %1108 = vmatpush2.bf16.msra.mxu1 %v1491_v50  ;;  %1048 = vmatprep.subr.bf16.mxu0 %v1496_v52 }
  0x89   :  { %1109 = vmatprep.subr.bf16.mxu1 %v1499_v53 }
  0x8b   :  { %1049 = vmatpush2.bf16.msra.mxu0 %v1494_v49 }
  0x8c   :  { %1110 = vmatpush2.bf16.msra.mxu1 %v1497_v51  ;;  %1050 = vmatprep.subr.bf16.mxu0 %v1502_v54 }
  0x8d   :  { %1111 = vmatprep.subr.bf16.mxu1 %v1505_v55 }
  0x8f   :  { %1051 = vmatpush2.bf16.msra.mxu0 %v1500_v56 }
  0x90   :  { %1112 = vmatpush2.bf16.msra.mxu1 %v1503_v57  ;;  %1052 = vmatprep.subr.bf16.mxu0 %v1514_v58 }
  0x91   :  { %1113 = vmatprep.subr.bf16.mxu1 %v1517_v59 }
  0x93   :  { %1053 = vmatpush2.bf16.msra.mxu0 %v1512_v60 }
  0x94   :  { %1114 = vmatpush2.bf16.msra.mxu1 %v1515_v61  ;;  %1054 = vmatprep.subr.bf16.mxu0 %v1520_v62 }
  0x95   :  { %1115 = vmatprep.subr.bf16.mxu1 %v1523_v63 }
  0x97   :  { %1055 = vmatpush2.bf16.msra.mxu0 %v1518_v0 }
  0x98   :  { %1116 = vmatpush2.bf16.msra.mxu1 %v1521_v1  ;;  %1056 = vmatprep.subr.bf16.mxu0 %v1530_v2 }
  0x99   :  { %1117 = vmatprep.subr.bf16.mxu1 %v1533_v3 }
  0x9b   :  { %1057 = vmatpush2.bf16.msra.mxu0 %v1528_v6 }
  0x9c   :  { %1118 = vmatpush2.bf16.msra.mxu1 %v1531_v7  ;;  %1058 = vmatprep.subr.bf16.mxu0 %v1536_v8 }
  0x9d   :  { %1119 = vmatprep.subr.bf16.mxu1 %v1539_v9 }
  0x9f   :  { %1059 = vmatpush2.bf16.msra.mxu0 %v1534_v10 }
  0xa0   :  { %1120 = vmatpush2.bf16.msra.mxu1 %v1537_v11  ;;  %1060 = vmatprep.subr.bf16.mxu0 %v1542_v12 }
  0xa1   :  { %1121 = vmatprep.subr.bf16.mxu1 %v1545_v13 }
  0xa3   :  { %1061 = vmatpush2.bf16.msra.mxu0 %v1540_v14 }
  0xa4   :  { %1122 = vmatpush2.bf16.msra.mxu1 %v1543_v15 }
  0xa6   :  { %1063 = vmatmul.mubr.bf16.vlgmr.msra.gmra.mxu0 %v1675_v4  ;;  %v1717_v4 = vshrl.u32 %v194_v16, 7 }
  0xa7   :  { %1124 = vmatmul.mubr.bf16.vlgmr.msra.gmra.mxu1 %v1677_v5  ;;  %1072 = vmatprep.mubr.bf16.mxu0 %v1681_v22 }
  0xa8   :  { %1133 = vmatprep.mubr.bf16.mxu1 %v1685_v24  ;;  %v196_v5 = vsub.s32 0, %v1717_v4  ;;  %v200_v18 = vsub.s32 1, %v1717_v4  ;;  %v204_v1 = vsub.s32 2, %v1717_v4  ;;  %v208_v2 = vsub.s32 3, %v1717_v4 }
  0xaa   :  { %v197_v19 = vrot.slane %v192_v17, %v196_v5  ;;  %v201_v20 = vrot.slane %v192_v17, %v200_v18  ;;  %v205_v3 = vrot.slane %v192_v17, %v204_v1  ;;  %v209_v6 = vrot.slane %v192_v17, %v208_v2 }
  0xae   :  { %1073 = vmatmul.mubr.bf16.gmra.mxu0 %v1683_v23 }
  0xaf   :  { %1134 = vmatmul.mubr.bf16.gmra.mxu1 %v1687_v25  ;;  %1082 = vmatprep.mubr.bf16.mxu0 %v1693_v31 }
  0xb0   :  { %1143 = vmatprep.mubr.bf16.mxu1 %v1697_v36 }
  0xb6   :  { %1083 = vmatmul.mubr.bf16.gmra.mxu0 %v1695_v32 }
  0xb7   :  { %1144 = vmatmul.mubr.bf16.gmra.mxu1 %v1699_v37 }
 0x126   :  { %v942_v21 = vpop.f32.mrf.mxu0 }
 0x127   :  { %v1003_v22 = vpop.f32.mrf.mxu1  ;;  %v943_v23 = vadd.f32 %v942_v21, %v197_v19 }
 0x128   :  { %v944_v24 = vpop.f32.mrf.mxu0 }
 0x129   :  { %v1005_v25 = vpop.f32.mrf.mxu1  ;;  %v1004_v26 = vadd.f32 %v1003_v22, %v943_v23  ;;  %v945_v27 = vadd.f32 %v944_v24, %v201_v20 }
 0x12a   :  { %v946_v28 = vpop.f32.mrf.mxu0 }
 0x12b   :  { %v1007_v29 = vpop.f32.mrf.mxu1  ;;  %1152 = vst [vmem:[#allocation8] sm:$0xff] %v1004_v26  ;;  %v1006_v30 = vadd.f32 %v1005_v25, %v945_v27  ;;  %v947_v31 = vadd.f32 %v946_v28, %v197_v19 }
 0x12c   :  { %v948_v32 = vpop.f32.mrf.mxu0 }
 0x12d   :  { %1153 = vst [vmem:[#allocation8 + $0x8] sm:$0xff] %v1006_v30  ;;  %v1008_v33 = vadd.f32 %v1007_v29, %v947_v31  ;;  %v949_v34 = vadd.f32 %v948_v32, %v201_v20  ;;  %v1009_v35 = vpop.f32.mrf.mxu1 }
 0x12e   :  { %v952_v37 = vpop.f32.mrf.mxu0 }
 0x12f   :  { %1156 = vst [vmem:[#allocation8 + $0x20] sm:$0xff] %v1008_v33  ;;  %v1010_v36 = vadd.f32 %v1009_v35, %v949_v34  ;;  %v1013_v38 = vpop.f32.mrf.mxu1  ;;  %v953_v39 = vadd.f32 %v952_v37, %v197_v19 }
 0x130   :  { %v954_v40 = vpop.f32.mrf.mxu0 }
 0x131   :  { %1157 = vst [vmem:[#allocation8 + $0x28] sm:$0xff] %v1010_v36  ;;  %v1015_v41 = vpop.f32.mrf.mxu1  ;;  %v955_v42 = vadd.f32 %v954_v40, %v201_v20  ;;  %v1014_v43 = vadd.f32 %v1013_v38, %v953_v39 }
 0x132   :  { %v956_v44 = vpop.f32.mrf.mxu0 }
 0x133   :  { %v1017_v45 = vpop.f32.mrf.mxu1  ;;  %1160 = vst [vmem:[#allocation8 + $0x40] sm:$0xff] %v1014_v43  ;;  %v957_v46 = vadd.f32 %v956_v44, %v197_v19  ;;  %v1016_v47 = vadd.f32 %v1015_v41, %v955_v42 }
 0x134   :  { %v958_v48 = vpop.f32.mrf.mxu0 }
 0x135   :  { %v1019_v50 = vpop.f32.mrf.mxu1  ;;  %1161 = vst [vmem:[#allocation8 + $0x48] sm:$0xff] %v1016_v47  ;;  %v959_v52 = vadd.f32 %v958_v48, %v201_v20  ;;  %v1018_v53 = vadd.f32 %v1017_v45, %v957_v46 }
 0x136   :  { %v962_v49 = vpop.f32.mrf.mxu0 }
 0x137   :  { %v1023_v51 = vpop.f32.mrf.mxu1  ;;  %1164 = vst [vmem:[#allocation8 + $0x60] sm:$0xff] %v1018_v53  ;;  %v963_v54 = vadd.f32 %v962_v49, %v197_v19  ;;  %v1020_v55 = vadd.f32 %v1019_v50, %v959_v52 }
 0x138   :  { %v964_v56 = vpop.f32.mrf.mxu0 }
 0x139   :  { %v1025_v57 = vpop.f32.mrf.mxu1  ;;  %1165 = vst [vmem:[#allocation8 + $0x68] sm:$0xff] %v1020_v55  ;;  %v965_v58 = vadd.f32 %v964_v56, %v201_v20  ;;  %v1024_v59 = vadd.f32 %v1023_v51, %v963_v54 }
 0x13a   :  { %v966_v60 = vpop.f32.mrf.mxu0 }
 0x13b   :  { %v1027_v61 = vpop.f32.mrf.mxu1  ;;  %1168 = vst [vmem:[#allocation8 + $0x80] sm:$0x3f] %v1024_v59  ;;  %v1026_v62 = vadd.f32 %v1025_v57, %v965_v58 }
 0x13c   :  { %v967_v63 = vpop.f32.mrf.mxu0 }
 0x13d   :  { %v1028_v0 = vpop.f32.mrf.mxu1  ;;  %1169 = vst [vmem:[#allocation8 + $0x88] sm:$0x3f] %v1026_v62 }
 0x166   :  { %v1064_v7 = vpop.f32.mrf.mxu0 }
 0x167   :  { %v1125_v8 = vpop.f32.mrf.mxu1  ;;  %v1065_v9 = vadd.f32 %v1064_v7, %v205_v3 }
 0x168   :  { %v1066_v10 = vpop.f32.mrf.mxu0 }
 0x169   :  { %v1127_v11 = vpop.f32.mrf.mxu1  ;;  %v1126_v12 = vadd.f32 %v1125_v8, %v1065_v9  ;;  %v1067_v13 = vadd.f32 %v1066_v10, %v209_v6 }
 0x16a   :  { %v1068_v14 = vpop.f32.mrf.mxu0 }
 0x16b   :  { %v1129_v15 = vpop.f32.mrf.mxu1  ;;  %1154 = vst [vmem:[#allocation8 + $0x10] sm:$0xff] %v1126_v12  ;;  %v1128_v16 = vadd.f32 %v1127_v11, %v1067_v13  ;;  %v1069_v5 = vadd.f32 %v1068_v14, %v205_v3 }
 0x16c   :  { %v1070_v18 = vpop.f32.mrf.mxu0 }
 0x16d   :  { %v1131_v19 = vpop.f32.mrf.mxu1  ;;  %1155 = vst [vmem:[#allocation8 + $0x18] sm:$0xff] %v1128_v16  ;;  %v1130_v20 = vadd.f32 %v1129_v15, %v1069_v5  ;;  %v1071_v21 = vadd.f32 %v1070_v18, %v209_v6 }
 0x16e   :  { %v1074_v4 = vpop.f32.mrf.mxu0 }
 0x16f   :  { %v1135_v22 = vpop.f32.mrf.mxu1  ;;  %1158 = vst [vmem:[#allocation8 + $0x30] sm:$0xff] %v1130_v20  ;;  %v1132_v17 = vadd.f32 %v1131_v19, %v1071_v21  ;;  %v1075_v23 = vadd.f32 %v1074_v4, %v205_v3 }
 0x170   :  { %v1076_v24 = vpop.f32.mrf.mxu0 }
 0x171   :  { %v1137_v25 = vpop.f32.mrf.mxu1  ;;  %1159 = vst [vmem:[#allocation8 + $0x38] sm:$0xff] %v1132_v17  ;;  %v1136_v26 = vadd.f32 %v1135_v22, %v1075_v23  ;;  %v1077_v27 = vadd.f32 %v1076_v24, %v209_v6 }
 0x172   :  { %v1078_v28 = vpop.f32.mrf.mxu0 }
 0x173   :  { %v1139_v29 = vpop.f32.mrf.mxu1  ;;  %1162 = vst [vmem:[#allocation8 + $0x50] sm:$0xff] %v1136_v26  ;;  %v1138_v30 = vadd.f32 %v1137_v25, %v1077_v27  ;;  %v1079_v31 = vadd.f32 %v1078_v28, %v205_v3 }
 0x174   :  { %v1080_v32 = vpop.f32.mrf.mxu0 }
 0x175   :  { %v1141_v33 = vpop.f32.mrf.mxu1  ;;  %1163 = vst [vmem:[#allocation8 + $0x58] sm:$0xff] %v1138_v30  ;;  %v1140_v34 = vadd.f32 %v1139_v29, %v1079_v31  ;;  %v1081_v35 = vadd.f32 %v1080_v32, %v209_v6 }
 0x176   :  { %v1084_v36 = vpop.f32.mrf.mxu0 }
 0x177   :  { %v1145_v37 = vpop.f32.mrf.mxu1  ;;  %1166 = vst [vmem:[#allocation8 + $0x70] sm:$0xff] %v1140_v34  ;;  %v1142_v38 = vadd.f32 %v1141_v33, %v1081_v35  ;;  %v1085_v39 = vadd.f32 %v1084_v36, %v205_v3 }
 0x178   :  { %v1086_v40 = vpop.f32.mrf.mxu0 }
 0x179   :  { %v1147_v41 = vpop.f32.mrf.mxu1  ;;  %1167 = vst [vmem:[#allocation8 + $0x78] sm:$0xff] %v1142_v38  ;;  %v1146_v42 = vadd.f32 %v1145_v37, %v1085_v39  ;;  %v1087_v43 = vadd.f32 %v1086_v40, %v209_v6 }
 0x17a   :  { %v1088_v44 = vpop.f32.mrf.mxu0 }
 0x17b   :  { %v1149_v45 = vpop.f32.mrf.mxu1  ;;  %1170 = vst [vmem:[#allocation8 + $0x90] sm:$0x3f] %v1146_v42  ;;  %v1148_v46 = vadd.f32 %v1147_v41, %v1087_v43 }
 0x17c   :  { %v1089_v47 = vpop.f32.mrf.mxu0 }
 0x17d   :  { %v1150_v48 = vpop.f32.mrf.mxu1  ;;  %1171 = vst [vmem:[#allocation8 + $0x98] sm:$0x3f] %v1148_v46 }
 0x17e   :  { %1617 = shalt.err (!%p1614_p5)
}
 0x17f   :  { %s1638_s29 = smov 512   ;;  %s1639_s30 = smov 32  }
 0x180   :  { %1183 = dma.vmem_to_hbm [thread:$0]  %s1178_s2, 2560, %s1729_s3, [#allocation4], %s1638_s29, %s1638_s29, %s1639_s30  }
 0x181   :  { %1630 = dma.done.wait [#allocation4], 2560  }
 0x182   :  { %1631 = vsyncadd [#allocation4], 4294964736 }
 0x183   :  { %1187 = vsyncpa [#allocation3], 1 }
 0x184   :  { %1188 = vsyncpa [#allocation6], 1 }
 0x185   :  { %1189 = vsyncpa [#allocation4], 1 }

</bundles_post_ra>
